<compile_context>
chip_gen: v5e
topology: v5e:2x2
jax: 0.10.0
libtpu: 0.0.40
codegen_flags: <defaults>
</compile_context>

<pallas_src>
import jax
import jax.numpy as jnp
from jax.experimental import pallas as pl
from jax.experimental.pallas import tpu as pltpu


def _round_up(x: int, m: int) -> int:
    return ((x + m - 1) // m) * m


def _round_down(x: int, m: int) -> int:
    return (x // m) * m


def _vmem_capacity_bytes() -> int:
    """Physical VMEM per TensorCore; conservative 64 MiB (v7x) if unknown."""
    try:
        cap = int(pltpu.get_tpu_info().vmem_capacity_bytes)
        if cap > 0:
            return cap
    except Exception:
        pass
    return 64 * 1024 * 1024


def _make_fused_mlp_kernel(n_layers: int):
    """Fused MLP kernel: Linear(+Mish) for hidden layers, plain Linear for the last."""

    def kernel(*refs):
        x_ref = refs[0]
        o_ref = refs[-1]
        param_refs = refs[1:-1]  # (w0, b0, w1, b1, ...)

        h = x_ref[...]
        for li in range(n_layers):
            w = param_refs[2 * li][...]          # (Kp, Np), pre-cast (e.g. bf16)
            b = param_refs[2 * li + 1][...]      # (1, Np), f32
            # Only the streamed activation tile is cast to the MXU dtype; the
            # (constant) weight block is used exactly as stored.
            hm = h if h.dtype == w.dtype else h.astype(w.dtype)
            y = jnp.dot(hm, w, preferred_element_type=jnp.float32) + b
            if li < n_layers - 1:
                # mish(y) = y * tanh(softplus(y))
                #        = y * ((1 + e^y)^2 - 1) / ((1 + e^y)^2 + 1)
                # Single EUP transcendental (exp); the divide goes to the EUP
                # via the approximate reciprocal (free relative to VALU).
                yc = jnp.minimum(y, 20.0)  # tanh(softplus(20)) == 1 in f32; avoids exp overflow
                e = jnp.exp(yc)
                t = (1.0 + e) * (1.0 + e)
                y = y * (t - 1.0) * pl.reciprocal(t + 1.0, approx=True)
            h = y
        o_ref[...] = h.astype(o_ref.dtype)

    return kernel


def init_mlp_params(key, features):
    """Deterministic init matching nn.Linear shapes: W_i is (features[i], features[i-1])."""
    params = []
    for i in range(1, len(features)):
        fan_in, fan_out = features[i - 1], features[i]
        key, kw, kb = jax.random.split(key, 3)
        bound = 1.0 / jnp.sqrt(fan_in)
        w = jax.random.uniform(kw, (fan_out, fan_in), jnp.float32, -bound, bound)
        b = jax.random.uniform(kb, (fan_out,), jnp.float32, -bound, bound)
        params.append((w, b))
    return params


def prepare_mlp_params(params, param_dtype=jnp.bfloat16):
    """One-time prep: transpose weights to (in, out), zero-pad feature dims to
    multiples of 128 (lane width) and pre-cast weights to the MXU dtype (bf16).
    Padded columns stay exactly zero through mish (mish(0) == 0) and padded
    weight rows are zero, so results are unaffected. Biases stay f32 (they add
    onto the f32 accumulator)."""
    n_layers = len(params)
    dims = [params[0][0].shape[1]] + [w.shape[0] for w, _ in params]
    pdims = [_round_up(d, 128) for d in dims]

    flat = []
    for i, (w, b) in enumerate(params):
        kp, np_ = pdims[i], pdims[i + 1]
        wt = jnp.zeros((kp, np_), jnp.float32).at[: w.shape[1], : w.shape[0]].set(w.T)
        wt = wt.astype(param_dtype)
        bp = jnp.zeros((1, np_), jnp.float32).at[0, : b.shape[0]].set(b)
        flat += [wt, bp]

    return {"dims": dims, "pdims": pdims, "flat": flat, "n_layers": n_layers}


def _build_call(n_layers, tm, pdims, Mp, out_dtype, vmem_limit, single_buffer_params):
    in_specs = [pl.BlockSpec((tm, pdims[0]), lambda i: (i, 0))]
    # NOTE: pl.Buffered(3) on the x-input spec could hide exposed DMA for very
    # narrow layers; only worth it if profiling shows the double-buffer short.
    extra = dict(pipeline_mode=pl.Buffered(1)) if single_buffer_params else {}
    for li in range(n_layers):
        kp, np_ = pdims[li], pdims[li + 1]
        in_specs.append(pl.BlockSpec((kp, np_), lambda i: (0, 0), **extra))  # resident weight
        in_specs.append(pl.BlockSpec((1, np_), lambda i: (0, 0), **extra))   # resident bias
    return pl.pallas_call(
        _make_fused_mlp_kernel(n_layers),
        out_shape=jax.ShapeDtypeStruct((Mp, pdims[-1]), out_dtype),
        grid=(Mp // tm,),
        in_specs=in_specs,
        out_specs=pl.BlockSpec((tm, pdims[-1]), lambda i: (i, 0)),
        compiler_params=pltpu.CompilerParams(
            dimension_semantics=("parallel",),
            vmem_limit_bytes=vmem_limit,
        ),
    )


def mlp_forward(x, prepped, *, tm=512, vmem_budget_bytes=None):
    """Fused Pallas MLP forward. x: (M, features[0]); dtype f32 or bf16."""
    M, K0 = x.shape
    dims, pdims = prepped["dims"], prepped["pdims"]
    n_layers = prepped["n_layers"]
    assert K0 == dims[0]

    # ---- generation-aware VMEM budget ----
    cap = _vmem_capacity_bytes()
    if vmem_budget_bytes is None:
        vmem_budget_bytes = cap * 3 // 4          # ~96 MiB on 128 MiB chips, 48 MiB on v7x
    vmem_cap = cap * 7 // 8                       # ~112 MiB / 56 MiB hard cap with headroom

    # ---- batch tiling: TM multiple of 8, >=2 grid steps when possible, fit budget ----
    tm = max(8, min(tm, _round_up(M, 8)))
    if M >= 16:
        # Keep at least 2 grid steps so v7x's second TensorCore gets work.
        tm = min(tm, _round_up((M + 1) // 2, 8))

    x_itemsize = jnp.dtype(x.dtype).itemsize
    w_itemsize = jnp.dtype(prepped["flat"][0].dtype).itemsize
    # Resident params: single-buffered (constant index_map + pl.Buffered(1)).
    param_bytes = sum(
        pdims[i] * pdims[i + 1] * w_itemsize + pdims[i + 1] * 4 for i in range(n_layers)
    )

    def tile_bytes(t):
        # double-buffered x tile + double-buffered out tile
        io_bytes = 2 * t * pdims[0] * x_itemsize + 2 * t * pdims[-1] * x_itemsize
        # f32 intermediates of the unrolled layer chain (activation, matmul
        # result, mish temporaries), counted generously at the widest layer.
        tmp_bytes = 3 * t * max(pdims) * 4
        return io_bytes + tmp_bytes

    while tm > 8 and param_bytes + tile_bytes(tm) > vmem_budget_bytes:
        tm = max(8, _round_down(tm // 2, 8))
    tm = max(8, tm)
    Mp = _round_up(M, tm)

    # TODO(synk): if the resident parameters alone exceed the budget (single
    # padded weight wider than ~half of VMEM, first on v7x), add a K/N-split
    # grid axis ("arbitrary", last) with an f32 VMEM accumulator + pl.when
    # init/finalize instead of letting TM bottom out at 8.

    vmem_limit = int(min(vmem_cap,
                         max(32 * 1024 * 1024,
                             param_bytes + tile_bytes(tm) + (4 << 20))))

    # ---- pad the activation only when needed (skip extra HBM passes if aligned) ----
    if Mp != M or pdims[0] != K0:
        xp = jnp.zeros((Mp, pdims[0]), x.dtype).at[:M, :K0].set(x)
    else:
        xp = x

    try:
        call = _build_call(n_layers, tm, pdims, Mp, x.dtype, vmem_limit,
                           single_buffer_params=True)
        out = call(xp, *prepped["flat"])
    except Exception:
        # Fallback: default (double) buffering for the constant parameter blocks.
        call = _build_call(n_layers, tm, pdims, Mp, x.dtype, vmem_limit,
                           single_buffer_params=False)
        out = call(xp, *prepped["flat"])

    if Mp != M or pdims[-1] != dims[-1]:
        out = out[:M, : dims[-1]]
    return out


def mlp_forward_ref(x, params):
    """Pure-JAX reference (matches the PyTorch module with default args)."""
    n_layers = len(params)
    for i, (w, b) in enumerate(params):
        x = x @ w.T + b
        if i < n_layers - 1:
            x = x * jnp.tanh(jax.nn.softplus(x))
    return x


if __name__ == "__main__":
    key = jax.random.PRNGKey(0)
    features = [16, 32, 8]   # MLP(features=[16, 32, 8])
    batch = 4

    key, kx, kp = jax.random.split(key, 3)
    x = jax.random.normal(kx, (batch, features[0]), jnp.float32)
    params = init_mlp_params(kp, features)
    prepped = prepare_mlp_params(params)            # bf16 weights, f32 biases

    out = mlp_forward(x, prepped)
    out = jax.block_until_ready(out)

    ref = mlp_forward_ref(x, params)
    assert out.shape == (batch, features[-1])
    # Tolerance accounts for bf16 MXU weights (~2^-8 relative) and the approx
    # EUP reciprocal in the cheap mish formulation; accumulation is f32.
    assert jnp.allclose(out, ref, atol=3e-2, rtol=3e-2), "Pallas MLP mismatch vs reference"

    print("KERNEL_OK")
</pallas_src>

<mosaic_0001>
module attributes {stable_mosaic.version = 11 : i64} {
  func.func @kernel(%arg0: i32, %arg1: memref<8x128xf32, #tpu.memory_space<vmem>>, %arg2: memref<128x128xbf16, #tpu.memory_space<vmem>>, %arg3: memref<1x128xf32, #tpu.memory_space<vmem>>, %arg4: memref<128x128xbf16, #tpu.memory_space<vmem>>, %arg5: memref<1x128xf32, #tpu.memory_space<vmem>>, %arg6: memref<8x128xf32, #tpu.memory_space<vmem>>) attributes {dimension_semantics = [#tpu.dimension_semantics<parallel>], iteration_bounds = array<i64: 1>, scalar_prefetch = 0 : i64, scratch_operands = 0 : i64, tpu.core_type = #tpu.core_type<tc>, window_params = [{transform_indices = @transform_0, window_bounds = array<i64: 8, 128>}, {pipeline_mode = #tpu.pipeline_mode<synchronous>, transform_indices = @transform_1, window_bounds = array<i64: 128, 128>}, {pipeline_mode = #tpu.pipeline_mode<synchronous>, transform_indices = @transform_2, window_bounds = array<i64: 1, 128>}, {pipeline_mode = #tpu.pipeline_mode<synchronous>, transform_indices = @transform_3, window_bounds = array<i64: 128, 128>}, {pipeline_mode = #tpu.pipeline_mode<synchronous>, transform_indices = @transform_4, window_bounds = array<i64: 1, 128>}, {transform_indices = @transform_5, window_bounds = array<i64: 8, 128>}]} {
    %c0 = arith.constant 0 : index
    %c0_0 = arith.constant 0 : index
    %0 = vector.load %arg1[%c0, %c0_0] : memref<8x128xf32, #tpu.memory_space<vmem>>, vector<8x128xf32>
    %c0_1 = arith.constant 0 : index
    %c0_2 = arith.constant 0 : index
    %1 = vector.load %arg2[%c0_1, %c0_2] : memref<128x128xbf16, #tpu.memory_space<vmem>>, vector<128x128xbf16>
    %c0_3 = arith.constant 0 : index
    %c0_4 = arith.constant 0 : index
    %2 = vector.load %arg3[%c0_3, %c0_4] : memref<1x128xf32, #tpu.memory_space<vmem>>, vector<1x128xf32>
    %3 = arith.truncf %0 : vector<8x128xf32> to vector<8x128xbf16>
    %cst = arith.constant dense<0.000000e+00> : vector<8x128xf32>
    %4 = tpu.matmul %3, %1, %cst {dimension_numbers = #tpu.dot_dimension_numbers<[1], [0], [0], [1], [0, 0, 1, 1], [], []>} : vector<8x128xbf16>, vector<128x128xbf16>, vector<8x128xf32> -> vector<8x128xf32>
    %5 = vector.broadcast %2 : vector<1x128xf32> to vector<8x128xf32>
    %6 = arith.addf %4, %5 : vector<8x128xf32>
    %cst_5 = arith.constant 2.000000e+01 : f32
    %7 = vector.broadcast %cst_5 : f32 to vector<8x128xf32>
    %8 = arith.minimumf %6, %7 : vector<8x128xf32>
    %9 = math.exp %8 : vector<8x128xf32>
    %cst_6 = arith.constant 1.000000e+00 : f32
    %10 = vector.broadcast %cst_6 : f32 to vector<8x128xf32>
    %11 = arith.addf %10, %9 : vector<8x128xf32>
    %cst_7 = arith.constant 1.000000e+00 : f32
    %12 = vector.broadcast %cst_7 : f32 to vector<8x128xf32>
    %13 = arith.addf %12, %9 : vector<8x128xf32>
    %14 = arith.mulf %11, %13 : vector<8x128xf32>
    %cst_8 = arith.constant 1.000000e+00 : f32
    %15 = vector.broadcast %cst_8 : f32 to vector<8x128xf32>
    %16 = arith.subf %14, %15 : vector<8x128xf32>
    %17 = arith.mulf %6, %16 : vector<8x128xf32>
    %cst_9 = arith.constant 1.000000e+00 : f32
    %18 = vector.broadcast %cst_9 : f32 to vector<8x128xf32>
    %19 = arith.addf %14, %18 : vector<8x128xf32>
    %20 = tpu.reciprocal %19 {approx = true} : vector<8x128xf32> -> vector<8x128xf32>
    %21 = arith.mulf %17, %20 : vector<8x128xf32>
    %c0_10 = arith.constant 0 : index
    %c0_11 = arith.constant 0 : index
    %22 = vector.load %arg4[%c0_10, %c0_11] : memref<128x128xbf16, #tpu.memory_space<vmem>>, vector<128x128xbf16>
    %c0_12 = arith.constant 0 : index
    %c0_13 = arith.constant 0 : index
    %23 = vector.load %arg5[%c0_12, %c0_13] : memref<1x128xf32, #tpu.memory_space<vmem>>, vector<1x128xf32>
    %24 = arith.truncf %21 : vector<8x128xf32> to vector<8x128xbf16>
    %cst_14 = arith.constant dense<0.000000e+00> : vector<8x128xf32>
    %25 = tpu.matmul %24, %22, %cst_14 {dimension_numbers = #tpu.dot_dimension_numbers<[1], [0], [0], [1], [0, 0, 1, 1], [], []>} : vector<8x128xbf16>, vector<128x128xbf16>, vector<8x128xf32> -> vector<8x128xf32>
    %26 = vector.broadcast %23 : vector<1x128xf32> to vector<8x128xf32>
    %27 = arith.addf %25, %26 : vector<8x128xf32>
    %c0_15 = arith.constant 0 : index
    %c0_16 = arith.constant 0 : index
    %28 = vector.load %arg6[%c0_15, %c0_16] : memref<8x128xf32, #tpu.memory_space<vmem>>, vector<8x128xf32>
    tpu.vector_store %arg6[%c0_15, %c0_16], %27 {strides = array<i32>} : memref<8x128xf32, #tpu.memory_space<vmem>>, vector<8x128xf32>,
    return
  }
  func.func @transform_0(%arg0: i32) -> (i32, i32) {
    %c0_i32 = arith.constant 0 : i32
    %c0_i32_0 = arith.constant 0 : i32
    return %arg0, %c0_i32 : i32, i32
  }
  func.func @transform_1(%arg0: i32) -> (i32, i32) {
    %c0_i32 = arith.constant 0 : i32
    %c0_i32_0 = arith.constant 0 : i32
    %c0_i32_1 = arith.constant 0 : i32
    return %c0_i32, %c0_i32_0 : i32, i32
  }
  func.func @transform_2(%arg0: i32) -> (i32, i32) {
    %c0_i32 = arith.constant 0 : i32
    %c0_i32_0 = arith.constant 0 : i32
    %c0_i32_1 = arith.constant 0 : i32
    return %c0_i32, %c0_i32_0 : i32, i32
  }
  func.func @transform_3(%arg0: i32) -> (i32, i32) {
    %c0_i32 = arith.constant 0 : i32
    %c0_i32_0 = arith.constant 0 : i32
    %c0_i32_1 = arith.constant 0 : i32
    return %c0_i32, %c0_i32_0 : i32, i32
  }
  func.func @transform_4(%arg0: i32) -> (i32, i32) {
    %c0_i32 = arith.constant 0 : i32
    %c0_i32_0 = arith.constant 0 : i32
    %c0_i32_1 = arith.constant 0 : i32
    return %c0_i32, %c0_i32_0 : i32, i32
  }
  func.func @transform_5(%arg0: i32) -> (i32, i32) {
    %c0_i32 = arith.constant 0 : i32
    %c0_i32_0 = arith.constant 0 : i32
    return %arg0, %c0_i32 : i32, i32
  }
}

module attributes {stable_mosaic.version = 11 : i64} {
  func.func @kernel(%arg0: i32, %arg1: memref<8x128xf32, #tpu.memory_space<vmem>>, %arg2: memref<128x128xbf16, #tpu.memory_space<vmem>>, %arg3: memref<1x128xf32, #tpu.memory_space<vmem>>, %arg4: memref<128x128xbf16, #tpu.memory_space<vmem>>, %arg5: memref<1x128xf32, #tpu.memory_space<vmem>>, %arg6: memref<8x128xf32, #tpu.memory_space<vmem>>) attributes {dimension_semantics = [#tpu.dimension_semantics<parallel>], iteration_bounds = array<i64: 1>, scalar_prefetch = 0 : i64, scratch_operands = 0 : i64, tpu.core_type = #tpu.core_type<tc>, window_params = [{transform_indices = @transform_0, window_bounds = array<i64: 8, 128>}, {pipeline_mode = #tpu.pipeline_mode<synchronous>, transform_indices = @transform_1, window_bounds = array<i64: 128, 128>}, {pipeline_mode = #tpu.pipeline_mode<synchronous>, transform_indices = @transform_2, window_bounds = array<i64: 1, 128>}, {pipeline_mode = #tpu.pipeline_mode<synchronous>, transform_indices = @transform_3, window_bounds = array<i64: 128, 128>}, {pipeline_mode = #tpu.pipeline_mode<synchronous>, transform_indices = @transform_4, window_bounds = array<i64: 1, 128>}, {transform_indices = @transform_5, window_bounds = array<i64: 8, 128>}]} {
    %c0 = arith.constant 0 : index
    %c0_0 = arith.constant 0 : index
    %0 = vector.load %arg1[%c0, %c0_0] : memref<8x128xf32, #tpu.memory_space<vmem>>, vector<8x128xf32>
    %c0_1 = arith.constant 0 : index
    %c0_2 = arith.constant 0 : index
    %1 = vector.load %arg2[%c0_1, %c0_2] : memref<128x128xbf16, #tpu.memory_space<vmem>>, vector<128x128xbf16>
    %c0_3 = arith.constant 0 : index
    %c0_4 = arith.constant 0 : index
    %2 = vector.load %arg3[%c0_3, %c0_4] : memref<1x128xf32, #tpu.memory_space<vmem>>, vector<1x128xf32>
    %3 = arith.truncf %0 : vector<8x128xf32> to vector<8x128xbf16>
    %cst = arith.constant dense<0.000000e+00> : vector<8x128xf32>
    %4 = tpu.matmul %3, %1, %cst {dimension_numbers = #tpu.dot_dimension_numbers<[1], [0], [0], [1], [0, 0, 1, 1], [], []>} : vector<8x128xbf16>, vector<128x128xbf16>, vector<8x128xf32> -> vector<8x128xf32>
    %5 = vector.broadcast %2 : vector<1x128xf32> to vector<8x128xf32>
    %6 = arith.addf %4, %5 : vector<8x128xf32>
    %cst_5 = arith.constant 2.000000e+01 : f32
    %7 = vector.broadcast %cst_5 : f32 to vector<8x128xf32>
    %8 = arith.minimumf %6, %7 : vector<8x128xf32>
    %9 = math.exp %8 : vector<8x128xf32>
    %cst_6 = arith.constant 1.000000e+00 : f32
    %10 = vector.broadcast %cst_6 : f32 to vector<8x128xf32>
    %11 = arith.addf %10, %9 : vector<8x128xf32>
    %cst_7 = arith.constant 1.000000e+00 : f32
    %12 = vector.broadcast %cst_7 : f32 to vector<8x128xf32>
    %13 = arith.addf %12, %9 : vector<8x128xf32>
    %14 = arith.mulf %11, %13 : vector<8x128xf32>
    %cst_8 = arith.constant 1.000000e+00 : f32
    %15 = vector.broadcast %cst_8 : f32 to vector<8x128xf32>
    %16 = arith.subf %14, %15 : vector<8x128xf32>
    %17 = arith.mulf %6, %16 : vector<8x128xf32>
    %cst_9 = arith.constant 1.000000e+00 : f32
    %18 = vector.broadcast %cst_9 : f32 to vector<8x128xf32>
    %19 = arith.addf %14, %18 : vector<8x128xf32>
    %20 = tpu.reciprocal %19 {approx = true} : vector<8x128xf32> -> vector<8x128xf32>
    %21 = arith.mulf %17, %20 : vector<8x128xf32>
    %c0_10 = arith.constant 0 : index
    %c0_11 = arith.constant 0 : index
    %22 = vector.load %arg4[%c0_10, %c0_11] : memref<128x128xbf16, #tpu.memory_space<vmem>>, vector<128x128xbf16>
    %c0_12 = arith.constant 0 : index
    %c0_13 = arith.constant 0 : index
    %23 = vector.load %arg5[%c0_12, %c0_13] : memref<1x128xf32, #tpu.memory_space<vmem>>, vector<1x128xf32>
    %24 = arith.truncf %21 : vector<8x128xf32> to vector<8x128xbf16>
    %cst_14 = arith.constant dense<0.000000e+00> : vector<8x128xf32>
    %25 = tpu.matmul %24, %22, %cst_14 {dimension_numbers = #tpu.dot_dimension_numbers<[1], [0], [0], [1], [0, 0, 1, 1], [], []>} : vector<8x128xbf16>, vector<128x128xbf16>, vector<8x128xf32> -> vector<8x128xf32>
    %26 = vector.broadcast %23 : vector<1x128xf32> to vector<8x128xf32>
    %27 = arith.addf %25, %26 : vector<8x128xf32>
    %c0_15 = arith.constant 0 : index
    %c0_16 = arith.constant 0 : index
    %28 = vector.load %arg6[%c0_15, %c0_16] : memref<8x128xf32, #tpu.memory_space<vmem>>, vector<8x128xf32>
    tpu.vector_store %arg6[%c0_15, %c0_16], %27 {strides = array<i32>} : memref<8x128xf32, #tpu.memory_space<vmem>>, vector<8x128xf32>,
    return
  }
  func.func @transform_0(%arg0: i32) -> (i32, i32) {
    %c0_i32 = arith.constant 0 : i32
    %c0_i32_0 = arith.constant 0 : i32
    return %arg0, %c0_i32 : i32, i32
  }
  func.func @transform_1(%arg0: i32) -> (i32, i32) {
    %c0_i32 = arith.constant 0 : i32
    %c0_i32_0 = arith.constant 0 : i32
    %c0_i32_1 = arith.constant 0 : i32
    return %c0_i32, %c0_i32_0 : i32, i32
  }
  func.func @transform_2(%arg0: i32) -> (i32, i32) {
    %c0_i32 = arith.constant 0 : i32
    %c0_i32_0 = arith.constant 0 : i32
    %c0_i32_1 = arith.constant 0 : i32
    return %c0_i32, %c0_i32_0 : i32, i32
  }
  func.func @transform_3(%arg0: i32) -> (i32, i32) {
    %c0_i32 = arith.constant 0 : i32
    %c0_i32_0 = arith.constant 0 : i32
    %c0_i32_1 = arith.constant 0 : i32
    return %c0_i32, %c0_i32_0 : i32, i32
  }
  func.func @transform_4(%arg0: i32) -> (i32, i32) {
    %c0_i32 = arith.constant 0 : i32
    %c0_i32_0 = arith.constant 0 : i32
    %c0_i32_1 = arith.constant 0 : i32
    return %c0_i32, %c0_i32_0 : i32, i32
  }
  func.func @transform_5(%arg0: i32) -> (i32, i32) {
    %c0_i32 = arith.constant 0 : i32
    %c0_i32_0 = arith.constant 0 : i32
    return %arg0, %c0_i32 : i32, i32
  }
}

</mosaic_0001>

<bundles_post_ra>
// kernel: tpu_custom_call.1
= control target key start
LH: loop header
LB: loop body
LE: loop exit
PB: predicated region body
PF: predicated region fallthrough
CT: control target
= control target key end

     0   :  { %10 = vsyncpa [#allocation3], 0  ;;  %s509_s0 = inlined_call_operand.hbm [shape: f32[8,128], index: 0, kind: input, shape index: {}]   ;;  %s510_s1 = inlined_call_operand.hbm [shape: bf16[128,128], index: 1, kind: input, shape index: {}]   ;;  %s511_s2 = inlined_call_operand.vmem [shape: f32[1,128], index: 2, kind: input, shape index: {}]   ;;  %s512_s3 = inlined_call_operand.hbm [shape: bf16[128,128], index: 3, kind: input, shape index: {}]   ;;  %s513_s4 = inlined_call_operand.vmem [shape: f32[1,128], index: 4, kind: input, shape index: {}]   ;;  %s514_s5 = inlined_call_operand.hbm [shape: f32[8,128], index: 5, kind: output, shape index: {}]  }
   0x1   :  { %11 = vsyncpa [#allocation6], 0  ;;  %s28_s20 = sshll.u32 %s510_s1, 4  ;;  %s29_s20 = int_to_ptr.hbm [resolvable:$true] %s28_s20 }
   0x2   :  { %12 = vsyncpa [#allocation4], 0  ;;  %s455_s21 = smov [#allocation5]   ;;  %s18_s25 = sshll.u32 %s509_s0, 4  ;;  %s19_s25 = int_to_ptr.hbm [resolvable:$true] %s18_s25 }
   0x3   :  { %s30_s22 = sshll.u32 %s455_s21, 4  ;;  %s456_s26 = smov 64   ;;  %s31_s22 = int_to_ptr.vmem [resolvable:$true] %s30_s22 }
   0x4   :  { %s457_s27 = smov 4   ;;  %s458_s28 = smov [#allocation2]  }
   0x5   :  { %36 = dma.hbm_to_vmem [thread:$0]  %s29_s20, 1024, %s31_s22, [#allocation6], %s456_s26, %s456_s26, %s457_s27  }
   0x6   :  { %s20_s29 = sshll.u32 %s458_s28, 4  ;;  %s43_s7 = sshll.u32 %s512_s3, 4  ;;  %s21_s29 = int_to_ptr.vmem [resolvable:$true] %s20_s29  ;;  %s44_s7 = int_to_ptr.hbm [resolvable:$true] %s43_s7 }
   0x7   :  { %23 = dma.hbm_to_vmem [thread:$0]  %s19_s25, 128, %s21_s29, [#allocation3]  }
   0x8   :  { %s459_s1 = smov [#allocation7]  }
   0x9   :  { %s45_s8 = sshll.u32 %s459_s1, 4  ;;  %s46_s8 = int_to_ptr.vmem [resolvable:$true] %s45_s8 }
   0xa   :  { %51 = dma.hbm_to_vmem [thread:$0]  %s44_s7, 1024, %s46_s8, [#allocation6], %s456_s26, %s456_s26, %s457_s27  }
   0xb   :  { %449 = dma.done.wait [#allocation3], 128  }
   0xc   :  { %450 = vsyncadd [#allocation3], 4294967168 }
   0xd   :  { %451 = dma.done.wait [#allocation6], 2048  }
   0xe   :  { %452 = vsyncadd [#allocation6], 4294965248  ;;  %v332_v0 = vld [vmem:[#allocation5 + $0x38] sm:$0xff]  ;;  %v331_v1 = vld [vmem:[#allocation5 + $0x30] sm:$0xff]  ;;  %s249_s14 = sshll.u32 %s514_s5, 4  ;;  %s250_s14 = int_to_ptr.hbm [resolvable:$true] %s249_s14 }
   0xf   :  { %136 = vmatpush.bf16.msra.mxu0 %v332_v0  ;;  %v330_v2 = vld [vmem:[#allocation5 + $0x28] sm:$0xff]  ;;  %v329_v3 = vld [vmem:[#allocation5 + $0x20] sm:$0xff]  ;;  %v328_v4 = vld [vmem:[#allocation5 + $0x18] sm:$0xff] }
  0x10   :  { %v327_v5 = vld [vmem:[#allocation5 + $0x10] sm:$0xff]  ;;  %v326_v6 = vld [vmem:[#allocation5 + $0x8] sm:$0xff]  ;;  %v325_v7 = vld [vmem:[#allocation5] sm:$0xff] }
  0x11   :  { %v66_v8 = vld [vmem:[#allocation2] sm:$0xff]  ;;  %v339_v11 = vld [vmem:[#allocation7 + $0x30] sm:$0xff]  ;;  %v338_v12 = vld [vmem:[#allocation7 + $0x28] sm:$0xff] }
  0x12   :  { %v84_v9 = vpack.c.bf16 %v66_v8, %v66_v8  ;;  %v340_v10 = vld [vmem:[#allocation7 + $0x38] sm:$0xff]  ;;  %v337_v13 = vld [vmem:[#allocation7 + $0x20] sm:$0xff]  ;;  %v335_v15 = vld [vmem:[#allocation7 + $0x10] sm:$0xff] }
  0x13   :  { %137 = vmatpush.bf16.msra.mxu0 %v331_v1  ;;  %228 = vmatpush.bf16.msra.mxu1 %v340_v10  ;;  %v336_v14 = vld [vmem:[#allocation7 + $0x18] sm:$0xff]  ;;  %v334_v16 = vld [vmem:[#allocation7 + $0x8] sm:$0xff]  ;;  %v333_v17 = vld [vmem:[#allocation7] sm:$0xff] }
  0x14   :  { %v347_v18 = vld [vmem:[%s511_s2] ss:$0 sm:$0xff]  ;;  %s460_s2 = smov [#allocation8]  }
  0x15   :  { %v348_v33 = vld [vmem:[%s513_s4] ss:$0 sm:$0xff]  ;;  %s247_s11 = sshll.u32 %s460_s2, 4  ;;  %s248_s11 = int_to_ptr.vmem [resolvable:$true] %s247_s11 }
  0x17   :  { %138 = vmatpush.bf16.msra.mxu0 %v330_v2  ;;  %229 = vmatpush.bf16.msra.mxu1 %v339_v11 }
  0x1b   :  { %139 = vmatpush.bf16.msra.mxu0 %v329_v3  ;;  %230 = vmatpush.bf16.msra.mxu1 %v338_v12 }
  0x1f   :  { %140 = vmatpush.bf16.msra.mxu0 %v328_v4  ;;  %231 = vmatpush.bf16.msra.mxu1 %v337_v13 }
  0x23   :  { %141 = vmatpush.bf16.msra.mxu0 %v327_v5  ;;  %232 = vmatpush.bf16.msra.mxu1 %v336_v14 }
  0x27   :  { %142 = vmatpush.bf16.msra.mxu0 %v326_v6  ;;  %233 = vmatpush.bf16.msra.mxu1 %v335_v15 }
  0x2b   :  { %143 = vmatpush.bf16.msra.mxu0 %v325_v7  ;;  %234 = vmatpush.bf16.msra.mxu1 %v334_v16 }
  0x2e   :  { %144 = vmatmul.bf16.vlgmr.msra.gmra.mxu0 %v84_v9 }
  0x2f   :  { %235 = vmatpush.bf16.msra.mxu1 %v333_v17 }
  0xab   :  { %v145_v19 = vpop.f32.mrf.mxu0 }
  0xac   :  { %v146_v20 = vadd.f32 %v347_v18, %v145_v19 }
  0xae   :  { %v149_v21 = vmin.f32 %v146_v20, 20.0 }
  0xb0   :  { %v150_v22 = vmul.f32 1.442695, %v149_v21 }
  0xb2   :  { %349 = vpow2.f32 %v150_v22 }
  0xb3   :  { %v147_v23 = vpop.f32.mrf.mxu0 }
  0xb8   :  { %v350_v24 = vpop.eup %349 }
  0xb9   :  { %v152_v25 = vadd.f32 1.0, %v350_v24 }
  0xbb   :  { %v153_v26 = vmul.f32 %v152_v25, %v152_v25 }
  0xbd   :  { %v156_v27 = vadd.f32 1.0, %v153_v26  ;;  %v292_v28 = vadd.f32 -1.0, %v153_v26 }
  0xbf   :  { %351 = vrcp.f32 %v156_v27  ;;  %v155_v29 = vmul.f32 %v292_v28, %v146_v20 }
  0xc5   :  { %v352_v30 = vpop.eup %351 }
  0xc6   :  { %v158_v31 = vmul.f32 %v352_v30, %v155_v29 }
  0xc8   :  { %v176_v32 = vpack.c.bf16 %v158_v31, %v158_v31 }
  0xca   :  { %236 = vmatmul.bf16.vlgmr.msra.gmra.mxu1 %v176_v32 }
 0x147   :  { %v237_v34 = vpop.f32.mrf.mxu1 }
 0x148   :  { %v238_v35 = vadd.f32 %v348_v33, %v237_v34 }
 0x14a   :  { %241 = vst [vmem:[#allocation8] sm:$0xff] %v238_v35 }
 0x14b   :  { %252 = dma.vmem_to_hbm [thread:$0]  %s248_s11, 128, %s250_s14, [#allocation4]  }
 0x14f   :  { %v239_v36 = vpop.f32.mrf.mxu1 }
 0x150   :  { %453 = dma.done.wait [#allocation4], 128  }
 0x151   :  { %454 = vsyncadd [#allocation4], 4294967168 }
 0x152   :  { %257 = vsyncpa [#allocation3], 1 }
 0x153   :  { %258 = vsyncpa [#allocation6], 1 }
 0x154   :  { %259 = vsyncpa [#allocation4], 1 }

// kernel: tpu_custom_call.1
= control target key start
LH: loop header
LB: loop body
LE: loop exit
PB: predicated region body
PF: predicated region fallthrough
CT: control target
= control target key end

     0   :  { %10 = vsyncpa [#allocation3], 0  ;;  %s509_s0 = inlined_call_operand.hbm [shape: f32[8,128], index: 0, kind: input, shape index: {}]   ;;  %s510_s1 = inlined_call_operand.hbm [shape: bf16[128,128], index: 1, kind: input, shape index: {}]   ;;  %s511_s2 = inlined_call_operand.vmem [shape: f32[1,128], index: 2, kind: input, shape index: {}]   ;;  %s512_s3 = inlined_call_operand.hbm [shape: bf16[128,128], index: 3, kind: input, shape index: {}]   ;;  %s513_s4 = inlined_call_operand.vmem [shape: f32[1,128], index: 4, kind: input, shape index: {}]   ;;  %s514_s5 = inlined_call_operand.hbm [shape: f32[8,128], index: 5, kind: output, shape index: {}]  }
   0x1   :  { %11 = vsyncpa [#allocation6], 0  ;;  %s28_s20 = sshll.u32 %s510_s1, 4  ;;  %s29_s20 = int_to_ptr.hbm [resolvable:$true] %s28_s20 }
   0x2   :  { %12 = vsyncpa [#allocation4], 0  ;;  %s455_s21 = smov [#allocation5]   ;;  %s18_s25 = sshll.u32 %s509_s0, 4  ;;  %s19_s25 = int_to_ptr.hbm [resolvable:$true] %s18_s25 }
   0x3   :  { %s30_s22 = sshll.u32 %s455_s21, 4  ;;  %s456_s26 = smov 64   ;;  %s31_s22 = int_to_ptr.vmem [resolvable:$true] %s30_s22 }
   0x4   :  { %s457_s27 = smov 4   ;;  %s458_s28 = smov [#allocation2]  }
   0x5   :  { %36 = dma.hbm_to_vmem [thread:$0]  %s29_s20, 1024, %s31_s22, [#allocation6], %s456_s26, %s456_s26, %s457_s27  }
   0x6   :  { %s20_s29 = sshll.u32 %s458_s28, 4  ;;  %s43_s7 = sshll.u32 %s512_s3, 4  ;;  %s21_s29 = int_to_ptr.vmem [resolvable:$true] %s20_s29  ;;  %s44_s7 = int_to_ptr.hbm [resolvable:$true] %s43_s7 }
   0x7   :  { %23 = dma.hbm_to_vmem [thread:$0]  %s19_s25, 128, %s21_s29, [#allocation3]  }
   0x8   :  { %s459_s1 = smov [#allocation7]  }
   0x9   :  { %s45_s8 = sshll.u32 %s459_s1, 4  ;;  %s46_s8 = int_to_ptr.vmem [resolvable:$true] %s45_s8 }
   0xa   :  { %51 = dma.hbm_to_vmem [thread:$0]  %s44_s7, 1024, %s46_s8, [#allocation6], %s456_s26, %s456_s26, %s457_s27  }
   0xb   :  { %449 = dma.done.wait [#allocation3], 128  }
   0xc   :  { %450 = vsyncadd [#allocation3], 4294967168 }
   0xd   :  { %451 = dma.done.wait [#allocation6], 2048  }
   0xe   :  { %452 = vsyncadd [#allocation6], 4294965248  ;;  %v332_v0 = vld [vmem:[#allocation5 + $0x38] sm:$0xff]  ;;  %v331_v1 = vld [vmem:[#allocation5 + $0x30] sm:$0xff]  ;;  %s249_s14 = sshll.u32 %s514_s5, 4  ;;  %s250_s14 = int_to_ptr.hbm [resolvable:$true] %s249_s14 }
   0xf   :  { %136 = vmatpush.bf16.msra.mxu0 %v332_v0  ;;  %v330_v2 = vld [vmem:[#allocation5 + $0x28] sm:$0xff]  ;;  %v329_v3 = vld [vmem:[#allocation5 + $0x20] sm:$0xff]  ;;  %v328_v4 = vld [vmem:[#allocation5 + $0x18] sm:$0xff] }
  0x10   :  { %v327_v5 = vld [vmem:[#allocation5 + $0x10] sm:$0xff]  ;;  %v326_v6 = vld [vmem:[#allocation5 + $0x8] sm:$0xff]  ;;  %v325_v7 = vld [vmem:[#allocation5] sm:$0xff] }
  0x11   :  { %v66_v8 = vld [vmem:[#allocation2] sm:$0xff]  ;;  %v339_v11 = vld [vmem:[#allocation7 + $0x30] sm:$0xff]  ;;  %v338_v12 = vld [vmem:[#allocation7 + $0x28] sm:$0xff] }
  0x12   :  { %v84_v9 = vpack.c.bf16 %v66_v8, %v66_v8  ;;  %v340_v10 = vld [vmem:[#allocation7 + $0x38] sm:$0xff]  ;;  %v337_v13 = vld [vmem:[#allocation7 + $0x20] sm:$0xff]  ;;  %v335_v15 = vld [vmem:[#allocation7 + $0x10] sm:$0xff] }
  0x13   :  { %137 = vmatpush.bf16.msra.mxu0 %v331_v1  ;;  %228 = vmatpush.bf16.msra.mxu1 %v340_v10  ;;  %v336_v14 = vld [vmem:[#allocation7 + $0x18] sm:$0xff]  ;;  %v334_v16 = vld [vmem:[#allocation7 + $0x8] sm:$0xff]  ;;  %v333_v17 = vld [vmem:[#allocation7] sm:$0xff] }
  0x14   :  { %v347_v18 = vld [vmem:[%s511_s2] ss:$0 sm:$0xff]  ;;  %s460_s2 = smov [#allocation8]  }
  0x15   :  { %v348_v33 = vld [vmem:[%s513_s4] ss:$0 sm:$0xff]  ;;  %s247_s11 = sshll.u32 %s460_s2, 4  ;;  %s248_s11 = int_to_ptr.vmem [resolvable:$true] %s247_s11 }
  0x17   :  { %138 = vmatpush.bf16.msra.mxu0 %v330_v2  ;;  %229 = vmatpush.bf16.msra.mxu1 %v339_v11 }
  0x1b   :  { %139 = vmatpush.bf16.msra.mxu0 %v329_v3  ;;  %230 = vmatpush.bf16.msra.mxu1 %v338_v12 }
  0x1f   :  { %140 = vmatpush.bf16.msra.mxu0 %v328_v4  ;;  %231 = vmatpush.bf16.msra.mxu1 %v337_v13 }
  0x23   :  { %141 = vmatpush.bf16.msra.mxu0 %v327_v5  ;;  %232 = vmatpush.bf16.msra.mxu1 %v336_v14 }
  0x27   :  { %142 = vmatpush.bf16.msra.mxu0 %v326_v6  ;;  %233 = vmatpush.bf16.msra.mxu1 %v335_v15 }
  0x2b   :  { %143 = vmatpush.bf16.msra.mxu0 %v325_v7  ;;  %234 = vmatpush.bf16.msra.mxu1 %v334_v16 }
  0x2e   :  { %144 = vmatmul.bf16.vlgmr.msra.gmra.mxu0 %v84_v9 }
  0x2f   :  { %235 = vmatpush.bf16.msra.mxu1 %v333_v17 }
  0xab   :  { %v145_v19 = vpop.f32.mrf.mxu0 }
  0xac   :  { %v146_v20 = vadd.f32 %v347_v18, %v145_v19 }
  0xae   :  { %v149_v21 = vmin.f32 %v146_v20, 20.0 }
  0xb0   :  { %v150_v22 = vmul.f32 1.442695, %v149_v21 }
  0xb2   :  { %349 = vpow2.f32 %v150_v22 }
  0xb3   :  { %v147_v23 = vpop.f32.mrf.mxu0 }
  0xb8   :  { %v350_v24 = vpop.eup %349 }
  0xb9   :  { %v152_v25 = vadd.f32 1.0, %v350_v24 }
  0xbb   :  { %v153_v26 = vmul.f32 %v152_v25, %v152_v25 }
  0xbd   :  { %v156_v27 = vadd.f32 1.0, %v153_v26  ;;  %v292_v28 = vadd.f32 -1.0, %v153_v26 }
  0xbf   :  { %351 = vrcp.f32 %v156_v27  ;;  %v155_v29 = vmul.f32 %v292_v28, %v146_v20 }
  0xc5   :  { %v352_v30 = vpop.eup %351 }
  0xc6   :  { %v158_v31 = vmul.f32 %v352_v30, %v155_v29 }
  0xc8   :  { %v176_v32 = vpack.c.bf16 %v158_v31, %v158_v31 }
  0xca   :  { %236 = vmatmul.bf16.vlgmr.msra.gmra.mxu1 %v176_v32 }
 0x147   :  { %v237_v34 = vpop.f32.mrf.mxu1 }
 0x148   :  { %v238_v35 = vadd.f32 %v348_v33, %v237_v34 }
 0x14a   :  { %241 = vst [vmem:[#allocation8] sm:$0xff] %v238_v35 }
 0x14b   :  { %252 = dma.vmem_to_hbm [thread:$0]  %s248_s11, 128, %s250_s14, [#allocation4]  }
 0x14f   :  { %v239_v36 = vpop.f32.mrf.mxu1 }
 0x150   :  { %453 = dma.done.wait [#allocation4], 128  }
 0x151   :  { %454 = vsyncadd [#allocation4], 4294967168 }
 0x152   :  { %257 = vsyncpa [#allocation3], 1 }
 0x153   :  { %258 = vsyncpa [#allocation6], 1 }
 0x154   :  { %259 = vsyncpa [#allocation4], 1 }

</bundles_post_ra>
